<compile_context>
chip_gen: v7x
topology: tpu7x:2x2x1
jax: 0.10.0
libtpu: 0.0.40
codegen_flags: <defaults>
</compile_context>

<pallas_src>
import functools

import numpy as np

import jax
import jax.numpy as jnp
from jax.experimental import pallas as pl
from jax.experimental.pallas import tpu as pltpu

EPS = 1e-5


# ----------------------------------------------------------------- helpers --

def _round_up(x, m):
    return (x + m - 1) // m * m


def _pick_block_n(n, cap=8):
    """Largest per-step sample count that divides N, keeps >= 2 grid steps when
    N >= 2 (so v7x's two TensorCores both get work) and stays under a small cap
    so the per-step VMEM footprint stays negligible."""
    best = 1
    for nb in range(1, min(n, cap) + 1):
        if n % nb == 0 and (n // nb) >= min(n, 2):
            best = nb
    return best


def _boundary_masks(h, w):
    """(9, H*W) f32 validity masks for the 3x3 SAME-conv lane shifts.
    Static in (H, W): built once on the host, not per grid step."""
    hw = h * w
    r = np.arange(hw) // w
    c = np.arange(hw) % w
    m = np.empty((9, hw), np.float32)
    for k in range(9):
        dy, dx = k // 3 - 1, k % 3 - 1
        m[k] = ((r + dy >= 0) & (r + dy < h) &
                (c + dx >= 0) & (c + dx < w)).astype(np.float32)
    return m


def _pad_axis(a, axis, target):
    pad = target - a.shape[axis]
    if pad == 0:
        return a
    cfg = [(0, 0)] * a.ndim
    cfg[axis] = (0, pad)
    return jnp.pad(a, cfg)


# ------------------------------------------------------------------ kernel --

def _instnorm_relu(y, eps):
    # y: (C, HW) f32. InstanceNorm2d (biased variance over HW) + ReLU.
    # Zero-padded channels stay exactly zero: d == 0 -> 0 * rsqrt(eps) = 0.
    mu = jnp.mean(y, axis=-1, keepdims=True)
    d = y - mu
    var = jnp.mean(d * d, axis=-1, keepdims=True)
    return jnp.maximum(d * jax.lax.rsqrt(var + eps), 0.0)


def _triple_block(x, masks, w1, w2, w3, H, W, eps):
    """ConvTripleBlock on one sample in (C, HW) layout -> (Cout, HW) f32.
    Conv biases are intentionally omitted: a per-channel constant cancels
    exactly through InstanceNorm(affine=False)."""
    f32 = jnp.float32

    # stage 1: 1x1 conv + IN + ReLU (native-dtype operands, f32 accumulation)
    y1 = _instnorm_relu(jnp.dot(w1, x, preferred_element_type=f32), eps)    # (Chp, HW)

    # stage 2: 3x3 SAME conv via im2col: 9 static lane shifts * precomputed
    # masks, then ONE matmul with K = 9*Chp (tile-aligned rows).
    taps = []
    for k in range(9):                                    # static unroll
        dy, dx = k // 3 - 1, k % 3 - 1
        off = dy * W + dx                                 # flat-index shift
        shifted = jnp.roll(y1, -off, axis=1) if off else y1
        taps.append(shifted * masks[k:k + 1])             # (Chp, HW)
    patches = jnp.concatenate(taps, axis=0)               # (9*Chp, HW)
    y2 = _instnorm_relu(
        jnp.dot(w2, patches.astype(w2.dtype), preferred_element_type=f32), eps)

    # stage 3: 1x1 conv + IN + ReLU
    return _instnorm_relu(
        jnp.dot(w3, y2.astype(w3.dtype), preferred_element_type=f32), eps)   # (Cout, HW)


def _residual_kernel_skipconv(x_ref, masks_ref, w1_ref, w2_ref, w3_ref,
                              ws_ref, bs_ref, o_ref, *, H, W, eps):
    f32 = jnp.float32
    masks = masks_ref[...]
    w1, w2, w3 = w1_ref[...], w2_ref[...], w3_ref[...]
    ws, bs = ws_ref[...], bs_ref[...]
    for b in range(x_ref.shape[0]):        # static unroll over the Nb samples
        x = x_ref[b]                       # (Cin, HW) native dtype (no upcast)
        y = _triple_block(x, masks, w1, w2, w3, H, W, eps)
        skip = jnp.dot(ws, x, preferred_element_type=f32) + bs.astype(f32)
        o_ref[b] = (y + skip).astype(o_ref.dtype)


def _residual_kernel_identity(x_ref, masks_ref, w1_ref, w2_ref, w3_ref,
                              o_ref, *, H, W, eps):
    masks = masks_ref[...]
    w1, w2, w3 = w1_ref[...], w2_ref[...], w3_ref[...]
    for b in range(x_ref.shape[0]):        # static unroll over the Nb samples
        x = x_ref[b]                       # (Cin, HW)
        y = _triple_block(x, masks, w1, w2, w3, H, W, eps)
        o_ref[b] = (y + x).astype(o_ref.dtype)            # identity skip


# ------------------------------------------------------------ pallas call ---

def _full_spec(shape):
    nd = len(shape)
    return pl.BlockSpec(shape, lambda n, _nd=nd: (0,) * _nd)


@jax.jit
def residual_forward(x_nchw, params):
    """x_nchw: (N, Cin, H, W). Returns (N, Cout, H, W). NCHW like PyTorch."""
    N, Cin, H, W = x_nchw.shape
    HW = H * W
    Ch = params["w1"].shape[1]
    Cout = params["w3"].shape[1]
    has_skip_conv = "ws" in params

    # NCHW -> (N, C, HW): pure reshape; spatial dim (multiple of 128) lands on
    # the 128-lane axis so stores are unmasked and the IN reduce is a lane reduce.
    x = x_nchw.reshape(N, Cin, HW)

    # Pad hidden channels to a sublane multiple once (zeros stay exactly zero
    # through conv(no bias) -> IN -> ReLU) and pre-transpose weights to the
    # lane-dense (Cout, K) math layout.
    chp = _round_up(Ch, 8)
    w1t = _pad_axis(params["w1"], 1, chp).T                     # (Chp, Cin)
    w2p = _pad_axis(_pad_axis(params["w2"], 1, chp), 2, chp)    # (9, Chp, Chp)
    w2t = w2p.reshape(9 * chp, chp).T                           # (Chp, 9*Chp)
    w3t = _pad_axis(params["w3"], 0, chp).T                     # (Cout, Chp)
    # b1/b2/b3 are NOT passed: they cancel exactly through InstanceNorm.

    masks = jnp.asarray(_boundary_masks(H, W))                  # (9, HW) f32

    nb = _pick_block_n(N)                                       # samples / grid step

    args = [x, masks, w1t, w2t, w3t]
    in_specs = [
        pl.BlockSpec((nb, Cin, HW), lambda n: (n, 0, 0)),
        _full_spec(masks.shape),
        _full_spec(w1t.shape), _full_spec(w2t.shape), _full_spec(w3t.shape),
    ]

    if has_skip_conv:
        wst = params["ws"].T                                    # (Cout, Cin)
        bs = params["bs"].reshape(Cout, 1)                      # kept: no norm after skip
        args += [wst, bs]
        in_specs += [_full_spec(wst.shape), _full_spec(bs.shape)]
        kernel = functools.partial(_residual_kernel_skipconv, H=H, W=W, eps=EPS)
    else:
        kernel = functools.partial(_residual_kernel_identity, H=H, W=W, eps=EPS)

    out = pl.pallas_call(
        kernel,
        out_shape=jax.ShapeDtypeStruct((N, Cout, HW), x_nchw.dtype),
        grid=(N // nb,),
        in_specs=in_specs,
        out_specs=pl.BlockSpec((nb, Cout, HW), lambda n: (n, 0, 0)),
        compiler_params=pltpu.CompilerParams(dimension_semantics=("parallel",)),
    )(*args)

    return out.reshape(N, Cout, H, W)


# ---------------------------------------------------------------- params ----

def init_residual_params(key, in_channels, out_channels, dtype=jnp.float32):
    ch = out_channels // 2
    ks = jax.random.split(key, 8)
    scale = 0.1
    params = dict(
        w1=scale * jax.random.normal(ks[0], (in_channels, ch), dtype),
        b1=scale * jax.random.normal(ks[1], (1, ch), dtype),        # cancels in IN
        w2=scale * jax.random.normal(ks[2], (9, ch, ch), dtype),    # (dy*3+dx, Cin, Cout)
        b2=scale * jax.random.normal(ks[3], (1, ch), dtype),        # cancels in IN
        w3=scale * jax.random.normal(ks[4], (ch, out_channels), dtype),
        b3=scale * jax.random.normal(ks[5], (1, out_channels), dtype),  # cancels in IN
    )
    if in_channels != out_channels:
        params["ws"] = scale * jax.random.normal(ks[6], (in_channels, out_channels), dtype)
        params["bs"] = scale * jax.random.normal(ks[7], (1, out_channels), dtype)
    return params


# -------------------------------------------------------- pure-JAX reference

def residual_reference(x_nchw, params, eps=EPS):
    def instnorm(x):
        mu = jnp.mean(x, axis=(1, 2), keepdims=True)
        var = jnp.mean((x - mu) ** 2, axis=(1, 2), keepdims=True)
        return (x - mu) * jax.lax.rsqrt(var + eps)

    def conv(x, w_hwio, b, pad):
        y = jax.lax.conv_general_dilated(
            x, w_hwio, (1, 1), pad, dimension_numbers=("NHWC", "HWIO", "NHWC"))
        return y + b.reshape(1, 1, 1, -1)

    x = jnp.transpose(x_nchw, (0, 2, 3, 1))
    w1 = params["w1"][None, None]
    w2 = params["w2"].reshape(3, 3, *params["w2"].shape[1:])
    w3 = params["w3"][None, None]
    # Reference keeps the conv biases -> also validates that dropping them in
    # the kernel (they cancel through InstanceNorm) is correct.
    y = jax.nn.relu(instnorm(conv(x, w1, params["b1"][0], "VALID")))
    y = jax.nn.relu(instnorm(conv(y, w2, params["b2"][0], "SAME")))
    y = jax.nn.relu(instnorm(conv(y, w3, params["b3"][0], "VALID")))
    if "ws" in params:
        z = conv(x, params["ws"][None, None], params["bs"][0], "VALID")
    else:
        z = x
    return jnp.transpose(y + z, (0, 3, 1, 2))


if __name__ == "__main__":
    key = jax.random.PRNGKey(0)
    k_x, k_p1, k_p2 = jax.random.split(key, 3)

    # Case 1: Cin != Cout (skip layer is a 1x1 conv)
    N, Cin, Cout, H, W = 2, 4, 8, 16, 16
    x = jax.random.normal(k_x, (N, Cin, H, W), jnp.float32)
    params = init_residual_params(k_p1, Cin, Cout)
    out = jax.block_until_ready(residual_forward(x, params))
    ref = residual_reference(x, params)
    assert out.shape == (N, Cout, H, W)
    assert jnp.allclose(out, ref, atol=1e-4, rtol=1e-4), "mismatch (conv skip) vs reference"

    # Case 2: Cin == Cout (identity skip, no skip matmul in the kernel)
    x2 = jax.random.normal(k_x, (N, Cout, H, W), jnp.float32)
    params_id = init_residual_params(k_p2, Cout, Cout)
    out2 = jax.block_until_ready(residual_forward(x2, params_id))
    ref2 = residual_reference(x2, params_id)
    assert jnp.allclose(out2, ref2, atol=1e-4, rtol=1e-4), "mismatch (identity skip) vs reference"

    print("KERNEL_OK")
</pallas_src>

<mosaic_0001>
module attributes {stable_mosaic.version = 11 : i64} {
  func.func @_residual_kernel_skipconv(%arg0: i32, %arg1: memref<1x4x256xf32, #tpu.memory_space<vmem>>, %arg2: memref<9x256xf32, #tpu.memory_space<vmem>>, %arg3: memref<8x4xf32, #tpu.memory_space<vmem>>, %arg4: memref<8x72xf32, #tpu.memory_space<vmem>>, %arg5: memref<8x8xf32, #tpu.memory_space<vmem>>, %arg6: memref<8x4xf32, #tpu.memory_space<vmem>>, %arg7: memref<8x1xf32, #tpu.memory_space<vmem>>, %arg8: memref<1x8x256xf32, #tpu.memory_space<vmem>>) attributes {dimension_semantics = [#tpu.dimension_semantics<parallel>], iteration_bounds = array<i64: 2>, scalar_prefetch = 0 : i64, scratch_operands = 0 : i64, tpu.core_type = #tpu.core_type<tc>, window_params = [{transform_indices = @transform_0, window_bounds = array<i64: 1, 4, 256>}, {pipeline_mode = #tpu.pipeline_mode<synchronous>, transform_indices = @transform_1, window_bounds = array<i64: 9, 256>}, {pipeline_mode = #tpu.pipeline_mode<synchronous>, transform_indices = @transform_2, window_bounds = array<i64: 8, 4>}, {pipeline_mode = #tpu.pipeline_mode<synchronous>, transform_indices = @transform_3, window_bounds = array<i64: 8, 72>}, {pipeline_mode = #tpu.pipeline_mode<synchronous>, transform_indices = @transform_4, window_bounds = array<i64: 8, 8>}, {pipeline_mode = #tpu.pipeline_mode<synchronous>, transform_indices = @transform_5, window_bounds = array<i64: 8, 4>}, {pipeline_mode = #tpu.pipeline_mode<synchronous>, transform_indices = @transform_6, window_bounds = array<i64: 8, 1>}, {transform_indices = @transform_7, window_bounds = array<i64: 1, 8, 256>}]} {
    %c0 = arith.constant 0 : index
    %c0_0 = arith.constant 0 : index
    %0 = vector.load %arg2[%c0, %c0_0] : memref<9x256xf32, #tpu.memory_space<vmem>>, vector<9x256xf32>
    %c0_1 = arith.constant 0 : index
    %c0_2 = arith.constant 0 : index
    %1 = vector.load %arg3[%c0_1, %c0_2] : memref<8x4xf32, #tpu.memory_space<vmem>>, vector<8x4xf32>
    %c0_3 = arith.constant 0 : index
    %c0_4 = arith.constant 0 : index
    %2 = vector.load %arg4[%c0_3, %c0_4] : memref<8x72xf32, #tpu.memory_space<vmem>>, vector<8x72xf32>
    %c0_5 = arith.constant 0 : index
    %c0_6 = arith.constant 0 : index
    %3 = vector.load %arg5[%c0_5, %c0_6] : memref<8x8xf32, #tpu.memory_space<vmem>>, vector<8x8xf32>
    %c0_7 = arith.constant 0 : index
    %c0_8 = arith.constant 0 : index
    %4 = vector.load %arg6[%c0_7, %c0_8] : memref<8x4xf32, #tpu.memory_space<vmem>>, vector<8x4xf32>
    %c0_9 = arith.constant 0 : index
    %c0_10 = arith.constant 0 : index
    %5 = vector.load %arg7[%c0_9, %c0_10] : memref<8x1xf32, #tpu.memory_space<vmem>>, vector<8x1xf32>
    %c0_11 = arith.constant 0 : index
    %c0_12 = arith.constant 0 : index
    %c0_13 = arith.constant 0 : index
    %6 = vector.load %arg1[%c0_11, %c0_12, %c0_13] : memref<1x4x256xf32, #tpu.memory_space<vmem>>, vector<1x4x256xf32>
    %7 = vector.shape_cast %6 : vector<1x4x256xf32> to vector<4x256xf32>
    %cst = arith.constant dense<0.000000e+00> : vector<8x256xf32>
    %8 = tpu.matmul %1, %7, %cst {dimension_numbers = #tpu.dot_dimension_numbers<[1], [0], [0], [1], [0, 0, 1, 1], [], []>} : vector<8x4xf32>, vector<4x256xf32>, vector<8x256xf32> -> vector<8x256xf32>
    %cst_14 = arith.constant dense<0.000000e+00> : vector<8xf32>
    %9 = vector.multi_reduction <add>, %8, %cst_14 [1] : vector<8x256xf32> to vector<8xf32>
    %10 = vector.shape_cast %9 : vector<8xf32> to vector<8x1xf32>
    %cst_15 = arith.constant 2.560000e+02 : f32
    %11 = vector.broadcast %cst_15 : f32 to vector<8x1xf32>
    %12 = arith.divf %10, %11 : vector<8x1xf32>
    %13 = vector.broadcast %12 : vector<8x1xf32> to vector<8x256xf32>
    %14 = arith.subf %8, %13 : vector<8x256xf32>
    %15 = arith.mulf %14, %14 : vector<8x256xf32>
    %cst_16 = arith.constant dense<0.000000e+00> : vector<8xf32>
    %16 = vector.multi_reduction <add>, %15, %cst_16 [1] : vector<8x256xf32> to vector<8xf32>
    %17 = vector.shape_cast %16 : vector<8xf32> to vector<8x1xf32>
    %cst_17 = arith.constant 2.560000e+02 : f32
    %18 = vector.broadcast %cst_17 : f32 to vector<8x1xf32>
    %19 = arith.divf %17, %18 : vector<8x1xf32>
    %cst_18 = arith.constant 9.99999974E-6 : f32
    %20 = vector.broadcast %cst_18 : f32 to vector<8x1xf32>
    %21 = arith.addf %19, %20 : vector<8x1xf32>
    %22 = math.rsqrt %21 : vector<8x1xf32>
    %23 = vector.broadcast %22 : vector<8x1xf32> to vector<8x256xf32>
    %24 = arith.mulf %14, %23 : vector<8x256xf32>
    %cst_19 = arith.constant 0.000000e+00 : f32
    %25 = vector.broadcast %cst_19 : f32 to vector<8x256xf32>
    %26 = arith.maximumf %24, %25 : vector<8x256xf32>
    %27 = vector.extract_strided_slice %26 {offsets = [0, 239], sizes = [8, 17], strides = [1, 1]} : vector<8x256xf32> to vector<8x17xf32>
    %28 = vector.extract_strided_slice %26 {offsets = [0, 0], sizes = [8, 239], strides = [1, 1]} : vector<8x256xf32> to vector<8x239xf32>
    %29 = tpu.concatenate %27, %28 in 1 : vector<8x17xf32>, vector<8x239xf32> -> vector<8x256xf32>
    %30 = vector.extract_strided_slice %0 {offsets = [0, 0], sizes = [1, 256], strides = [1, 1]} : vector<9x256xf32> to vector<1x256xf32>
    %31 = vector.broadcast %30 : vector<1x256xf32> to vector<8x256xf32>
    %32 = arith.mulf %29, %31 : vector<8x256xf32>
    %33 = vector.extract_strided_slice %26 {offsets = [0, 240], sizes = [8, 16], strides = [1, 1]} : vector<8x256xf32> to vector<8x16xf32>
    %34 = vector.extract_strided_slice %26 {offsets = [0, 0], sizes = [8, 240], strides = [1, 1]} : vector<8x256xf32> to vector<8x240xf32>
    %35 = tpu.concatenate %33, %34 in 1 : vector<8x16xf32>, vector<8x240xf32> -> vector<8x256xf32>
    %36 = vector.extract_strided_slice %0 {offsets = [1, 0], sizes = [1, 256], strides = [1, 1]} : vector<9x256xf32> to vector<1x256xf32>
    %37 = vector.broadcast %36 : vector<1x256xf32> to vector<8x256xf32>
    %38 = arith.mulf %35, %37 : vector<8x256xf32>
    %39 = vector.extract_strided_slice %26 {offsets = [0, 241], sizes = [8, 15], strides = [1, 1]} : vector<8x256xf32> to vector<8x15xf32>
    %40 = vector.extract_strided_slice %26 {offsets = [0, 0], sizes = [8, 241], strides = [1, 1]} : vector<8x256xf32> to vector<8x241xf32>
    %41 = tpu.concatenate %39, %40 in 1 : vector<8x15xf32>, vector<8x241xf32> -> vector<8x256xf32>
    %42 = vector.extract_strided_slice %0 {offsets = [2, 0], sizes = [1, 256], strides = [1, 1]} : vector<9x256xf32> to vector<1x256xf32>
    %43 = vector.broadcast %42 : vector<1x256xf32> to vector<8x256xf32>
    %44 = arith.mulf %41, %43 : vector<8x256xf32>
    %45 = vector.extract_strided_slice %26 {offsets = [0, 255], sizes = [8, 1], strides = [1, 1]} : vector<8x256xf32> to vector<8x1xf32>
    %46 = vector.extract_strided_slice %26 {offsets = [0, 0], sizes = [8, 255], strides = [1, 1]} : vector<8x256xf32> to vector<8x255xf32>
    %47 = tpu.concatenate %45, %46 in 1 : vector<8x1xf32>, vector<8x255xf32> -> vector<8x256xf32>
    %48 = vector.extract_strided_slice %0 {offsets = [3, 0], sizes = [1, 256], strides = [1, 1]} : vector<9x256xf32> to vector<1x256xf32>
    %49 = vector.broadcast %48 : vector<1x256xf32> to vector<8x256xf32>
    %50 = arith.mulf %47, %49 : vector<8x256xf32>
    %51 = vector.extract_strided_slice %0 {offsets = [4, 0], sizes = [1, 256], strides = [1, 1]} : vector<9x256xf32> to vector<1x256xf32>
    %52 = vector.broadcast %51 : vector<1x256xf32> to vector<8x256xf32>
    %53 = arith.mulf %26, %52 : vector<8x256xf32>
    %54 = vector.extract_strided_slice %26 {offsets = [0, 1], sizes = [8, 255], strides = [1, 1]} : vector<8x256xf32> to vector<8x255xf32>
    %55 = vector.extract_strided_slice %26 {offsets = [0, 0], sizes = [8, 1], strides = [1, 1]} : vector<8x256xf32> to vector<8x1xf32>
    %56 = tpu.concatenate %54, %55 in 1 : vector<8x255xf32>, vector<8x1xf32> -> vector<8x256xf32>
    %57 = vector.extract_strided_slice %0 {offsets = [5, 0], sizes = [1, 256], strides = [1, 1]} : vector<9x256xf32> to vector<1x256xf32>
    %58 = vector.broadcast %57 : vector<1x256xf32> to vector<8x256xf32>
    %59 = arith.mulf %56, %58 : vector<8x256xf32>
    %60 = vector.extract_strided_slice %26 {offsets = [0, 15], sizes = [8, 241], strides = [1, 1]} : vector<8x256xf32> to vector<8x241xf32>
    %61 = vector.extract_strided_slice %26 {offsets = [0, 0], sizes = [8, 15], strides = [1, 1]} : vector<8x256xf32> to vector<8x15xf32>
    %62 = tpu.concatenate %60, %61 in 1 : vector<8x241xf32>, vector<8x15xf32> -> vector<8x256xf32>
    %63 = vector.extract_strided_slice %0 {offsets = [6, 0], sizes = [1, 256], strides = [1, 1]} : vector<9x256xf32> to vector<1x256xf32>
    %64 = vector.broadcast %63 : vector<1x256xf32> to vector<8x256xf32>
    %65 = arith.mulf %62, %64 : vector<8x256xf32>
    %66 = vector.extract_strided_slice %26 {offsets = [0, 16], sizes = [8, 240], strides = [1, 1]} : vector<8x256xf32> to vector<8x240xf32>
    %67 = vector.extract_strided_slice %26 {offsets = [0, 0], sizes = [8, 16], strides = [1, 1]} : vector<8x256xf32> to vector<8x16xf32>
    %68 = tpu.concatenate %66, %67 in 1 : vector<8x240xf32>, vector<8x16xf32> -> vector<8x256xf32>
    %69 = vector.extract_strided_slice %0 {offsets = [7, 0], sizes = [1, 256], strides = [1, 1]} : vector<9x256xf32> to vector<1x256xf32>
    %70 = vector.broadcast %69 : vector<1x256xf32> to vector<8x256xf32>
    %71 = arith.mulf %68, %70 : vector<8x256xf32>
    %72 = vector.extract_strided_slice %26 {offsets = [0, 17], sizes = [8, 239], strides = [1, 1]} : vector<8x256xf32> to vector<8x239xf32>
    %73 = vector.extract_strided_slice %26 {offsets = [0, 0], sizes = [8, 17], strides = [1, 1]} : vector<8x256xf32> to vector<8x17xf32>
    %74 = tpu.concatenate %72, %73 in 1 : vector<8x239xf32>, vector<8x17xf32> -> vector<8x256xf32>
    %75 = vector.extract_strided_slice %0 {offsets = [8, 0], sizes = [1, 256], strides = [1, 1]} : vector<9x256xf32> to vector<1x256xf32>
    %76 = vector.broadcast %75 : vector<1x256xf32> to vector<8x256xf32>
    %77 = arith.mulf %74, %76 : vector<8x256xf32>
    %78 = tpu.concatenate %32, %38, %44, %50, %53, %59, %65, %71, %77 in 0 : vector<8x256xf32>, vector<8x256xf32>, vector<8x256xf32>, vector<8x256xf32>, vector<8x256xf32>, vector<8x256xf32>, vector<8x256xf32>, vector<8x256xf32>, vector<8x256xf32> -> vector<72x256xf32>
    %cst_20 = arith.constant dense<0.000000e+00> : vector<8x256xf32>
    %79 = tpu.matmul %2, %78, %cst_20 {dimension_numbers = #tpu.dot_dimension_numbers<[1], [0], [0], [1], [0, 0, 1, 1], [], []>} : vector<8x72xf32>, vector<72x256xf32>, vector<8x256xf32> -> vector<8x256xf32>
    %cst_21 = arith.constant dense<0.000000e+00> : vector<8xf32>
    %80 = vector.multi_reduction <add>, %79, %cst_21 [1] : vector<8x256xf32> to vector<8xf32>
    %81 = vector.shape_cast %80 : vector<8xf32> to vector<8x1xf32>
    %cst_22 = arith.constant 2.560000e+02 : f32
    %82 = vector.broadcast %cst_22 : f32 to vector<8x1xf32>
    %83 = arith.divf %81, %82 : vector<8x1xf32>
    %84 = vector.broadcast %83 : vector<8x1xf32> to vector<8x256xf32>
    %85 = arith.subf %79, %84 : vector<8x256xf32>
    %86 = arith.mulf %85, %85 : vector<8x256xf32>
    %cst_23 = arith.constant dense<0.000000e+00> : vector<8xf32>
    %87 = vector.multi_reduction <add>, %86, %cst_23 [1] : vector<8x256xf32> to vector<8xf32>
    %88 = vector.shape_cast %87 : vector<8xf32> to vector<8x1xf32>
    %cst_24 = arith.constant 2.560000e+02 : f32
    %89 = vector.broadcast %cst_24 : f32 to vector<8x1xf32>
    %90 = arith.divf %88, %89 : vector<8x1xf32>
    %cst_25 = arith.constant 9.99999974E-6 : f32
    %91 = vector.broadcast %cst_25 : f32 to vector<8x1xf32>
    %92 = arith.addf %90, %91 : vector<8x1xf32>
    %93 = math.rsqrt %92 : vector<8x1xf32>
    %94 = vector.broadcast %93 : vector<8x1xf32> to vector<8x256xf32>
    %95 = arith.mulf %85, %94 : vector<8x256xf32>
    %cst_26 = arith.constant 0.000000e+00 : f32
    %96 = vector.broadcast %cst_26 : f32 to vector<8x256xf32>
    %97 = arith.maximumf %95, %96 : vector<8x256xf32>
    %cst_27 = arith.constant dense<0.000000e+00> : vector<8x256xf32>
    %98 = tpu.matmul %3, %97, %cst_27 {dimension_numbers = #tpu.dot_dimension_numbers<[1], [0], [0], [1], [0, 0, 1, 1], [], []>} : vector<8x8xf32>, vector<8x256xf32>, vector<8x256xf32> -> vector<8x256xf32>
    %cst_28 = arith.constant dense<0.000000e+00> : vector<8xf32>
    %99 = vector.multi_reduction <add>, %98, %cst_28 [1] : vector<8x256xf32> to vector<8xf32>
    %100 = vector.shape_cast %99 : vector<8xf32> to vector<8x1xf32>
    %cst_29 = arith.constant 2.560000e+02 : f32
    %101 = vector.broadcast %cst_29 : f32 to vector<8x1xf32>
    %102 = arith.divf %100, %101 : vector<8x1xf32>
    %103 = vector.broadcast %102 : vector<8x1xf32> to vector<8x256xf32>
    %104 = arith.subf %98, %103 : vector<8x256xf32>
    %105 = arith.mulf %104, %104 : vector<8x256xf32>
    %cst_30 = arith.constant dense<0.000000e+00> : vector<8xf32>
    %106 = vector.multi_reduction <add>, %105, %cst_30 [1] : vector<8x256xf32> to vector<8xf32>
    %107 = vector.shape_cast %106 : vector<8xf32> to vector<8x1xf32>
    %cst_31 = arith.constant 2.560000e+02 : f32
    %108 = vector.broadcast %cst_31 : f32 to vector<8x1xf32>
    %109 = arith.divf %107, %108 : vector<8x1xf32>
    %cst_32 = arith.constant 9.99999974E-6 : f32
    %110 = vector.broadcast %cst_32 : f32 to vector<8x1xf32>
    %111 = arith.addf %109, %110 : vector<8x1xf32>
    %112 = math.rsqrt %111 : vector<8x1xf32>
    %113 = vector.broadcast %112 : vector<8x1xf32> to vector<8x256xf32>
    %114 = arith.mulf %104, %113 : vector<8x256xf32>
    %cst_33 = arith.constant 0.000000e+00 : f32
    %115 = vector.broadcast %cst_33 : f32 to vector<8x256xf32>
    %116 = arith.maximumf %114, %115 : vector<8x256xf32>
    %cst_34 = arith.constant dense<0.000000e+00> : vector<8x256xf32>
    %117 = tpu.matmul %4, %7, %cst_34 {dimension_numbers = #tpu.dot_dimension_numbers<[1], [0], [0], [1], [0, 0, 1, 1], [], []>} : vector<8x4xf32>, vector<4x256xf32>, vector<8x256xf32> -> vector<8x256xf32>
    %118 = vector.broadcast %5 : vector<8x1xf32> to vector<8x256xf32>
    %119 = arith.addf %117, %118 : vector<8x256xf32>
    %120 = arith.addf %116, %119 : vector<8x256xf32>
    %c0_35 = arith.constant 0 : index
    %c0_36 = arith.constant 0 : index
    %c0_37 = arith.constant 0 : index
    %121 = vector.load %arg8[%c0_35, %c0_36, %c0_37] : memref<1x8x256xf32, #tpu.memory_space<vmem>>, vector<1x8x256xf32>
    %122 = vector.shape_cast %121 : vector<1x8x256xf32> to vector<8x256xf32>
    %123 = vector.shape_cast %120 : vector<8x256xf32> to vector<1x8x256xf32>
    tpu.vector_store %arg8[%c0_35, %c0_36, %c0_37], %123 {strides = array<i32>} : memref<1x8x256xf32, #tpu.memory_space<vmem>>, vector<1x8x256xf32>,
    return
  }
  func.func @transform_0(%arg0: i32) -> (i32, i32, i32) {
    %c0_i32 = arith.constant 0 : i32
    %c0_i32_0 = arith.constant 0 : i32
    %c0_i32_1 = arith.constant 0 : i32
    return %arg0, %c0_i32, %c0_i32_0 : i32, i32, i32
  }
  func.func @transform_1(%arg0: i32) -> (i32, i32) {
    %c0_i32 = arith.constant 0 : i32
    %c0_i32_0 = arith.constant 0 : i32
    %c0_i32_1 = arith.constant 0 : i32
    return %c0_i32, %c0_i32_0 : i32, i32
  }
  func.func @transform_2(%arg0: i32) -> (i32, i32) {
    %c0_i32 = arith.constant 0 : i32
    %c0_i32_0 = arith.constant 0 : i32
    %c0_i32_1 = arith.constant 0 : i32
    return %c0_i32, %c0_i32_0 : i32, i32
  }
  func.func @transform_3(%arg0: i32) -> (i32, i32) {
    %c0_i32 = arith.constant 0 : i32
    %c0_i32_0 = arith.constant 0 : i32
    %c0_i32_1 = arith.constant 0 : i32
    return %c0_i32, %c0_i32_0 : i32, i32
  }
  func.func @transform_4(%arg0: i32) -> (i32, i32) {
    %c0_i32 = arith.constant 0 : i32
    %c0_i32_0 = arith.constant 0 : i32
    %c0_i32_1 = arith.constant 0 : i32
    return %c0_i32, %c0_i32_0 : i32, i32
  }
  func.func @transform_5(%arg0: i32) -> (i32, i32) {
    %c0_i32 = arith.constant 0 : i32
    %c0_i32_0 = arith.constant 0 : i32
    %c0_i32_1 = arith.constant 0 : i32
    return %c0_i32, %c0_i32_0 : i32, i32
  }
  func.func @transform_6(%arg0: i32) -> (i32, i32) {
    %c0_i32 = arith.constant 0 : i32
    %c0_i32_0 = arith.constant 0 : i32
    %c0_i32_1 = arith.constant 0 : i32
    return %c0_i32, %c0_i32_0 : i32, i32
  }
  func.func @transform_7(%arg0: i32) -> (i32, i32, i32) {
    %c0_i32 = arith.constant 0 : i32
    %c0_i32_0 = arith.constant 0 : i32
    %c0_i32_1 = arith.constant 0 : i32
    return %arg0, %c0_i32, %c0_i32_0 : i32, i32, i32
  }
}

</mosaic_0001>

<bundles_post_ra>
// kernel: residual_forward.1
= control target key start
LH: loop header
LB: loop body
LE: loop exit
PB: predicated region body
PF: predicated region fallthrough
CT: control target
= control target key end

     0   :  { %s1009_s24 = smov 0   ;;  %s1131_s0 = inlined_call_operand.vmem [shape: f32[2,4,256], index: 0, kind: input, shape index: {}]   ;;  %s1132_s1 = inlined_call_operand.vmem [shape: f32[9,256], index: 1, kind: input, shape index: {}]   ;;  %s1133_s2 = inlined_call_operand.vmem [shape: f32[8,4], index: 2, kind: input, shape index: {}]   ;;  %s1134_s3 = inlined_call_operand.vmem [shape: f32[8,72], index: 3, kind: input, shape index: {}]   ;;  %s1135_s4 = inlined_call_operand.vmem [shape: f32[8,8], index: 4, kind: input, shape index: {}]   ;;  %s1136_s5 = inlined_call_operand.vmem [shape: f32[8,4], index: 5, kind: input, shape index: {}]   ;;  %s1137_s6 = inlined_call_operand.vmem [shape: f32[8,1], index: 6, kind: input, shape index: {}]   ;;  %s1138_s7 = inlined_call_operand.vmem [shape: f32[2,8,256], index: 7, kind: output, shape index: {}]  }
   0x1 LB: > { %s886_s25 = sadd.s32 4294967295, %s957_s24   ;;  %p890_p0 = scmp.ge.s32.totalorder %s957_s24, 1  ;;  %s957_s24 = sphi %s1009_s24, %s17_s24  }
   0x2   : > { %p237_p1 = scmp.lt.s32.totalorder %s957_s24, 3 }
   0x4   : > { %p238_p2 = pnand %p890_p0, %p237_p1 }
   0x5   : > { %p269_p3 = scmp.lt.s32.totalorder (!%p238_p2), %s886_s25, 1  ;;  %v959_v0 = vmov (!%p238_p2), 0.0   ;;  %vm295_vm0 = vcmask (!%p238_p2), 1043456   ;;  %v283_v3 = vld [vmem:[%s1133_s2] sm:$0xff] (!%p238_p2)  ;;  %vm291_vm1 = vcmask (!%p238_p2), 31744   ;;  %s960_s9 = smov (!%p238_p2), 16   ;;  %v402_v22 = vlaneseq (!%p238_p2) }
   0x6   : > { %241 = sbr.rel (%p238_p2) target bundleno = 1766 (0x6e6), region = 48  ;;  %364 = vmatprep.mubr.f32.mxu0 (!%p238_p2), %v959_v0  ;;  %630 = vmatprep.mubr.f32.mxu1 (!%p238_p2), %v959_v0  ;;  %s961_s10 = smov (!%p238_p2), 17   ;;  %v1067_v27 = vld [vmem:[%s1132_s1] sm:$0xff] (!%p238_p2)  ;;  %vm397_vm2 = vcmask (!%p238_p2), 138240   ;;  %v1073_v30 = vld [vmem:[%s1132_s1 + $0x8] sm:$0xff] (!%p238_p2)  ;;  %vm417_vm3 = vcmask (!%p238_p2), 130048  }
   0x7   : > { %s962_s11 = smov (!%p238_p2), 127   ;;  %s963_s12 = smov (!%p238_p2), 113   ;;  %v1060_v23 = vshrl.u32 (!%p238_p2), %v402_v22, 7  ;;  %vm437_vm4 = vcmask (!%p238_p2), 121856   ;;  %vm457_vm5 = vcmask (!%p238_p2), 7168   ;;  %vm486_vm6 = vcmask (!%p238_p2), 1039360  }
   0x8   : > { %s964_s13 = smov (!%p238_p2), 112   ;;  %s965_s14 = smov (!%p238_p2), 15   ;;  %vm506_vm7 = vcmask (!%p238_p2), 924672   ;;  %vm526_vm8 = vcmask (!%p238_p2), 916480   ;;  %vm546_vm9 = vcmask (!%p238_p2), 908288   ;;  %vm562_vm10 = vcmask (!%p238_p2), 588800  }
   0x9   : > { %s966_s15 = smov (!%p238_p2), 111   ;;  %s967_s16 = smov (!%p238_p2), 1   ;;  %v404_v25 = vsub.s32 (!%p238_p2), 0, %v1060_v23  ;;  %v424_v26 = vsub.s32 (!%p238_p2), 1, %v1060_v23  ;;  %v444_v48 = vsub.s32 (!%p238_p2), 2, %v1060_v23  ;;  %v464_v49 = vsub.s32 (!%p238_p2), 3, %v1060_v23 }
   0xa   : > { %v474_v51 = vsub.s32 (!%p238_p2), 4, %v1060_v23  ;;  %v494_v53 = vsub.s32 (!%p238_p2), 5, %v1060_v23  ;;  %vm655_vm11 = vcmask (!%p238_p2), 64512  }
   0xb   : > { %v405_v29 = vrot.slane (!%p238_p2), %v1067_v27, %v404_v25  ;;  %v425_v31 = vrot.slane (!%p238_p2), %v1067_v27, %v424_v26  ;;  %v409_v32 = vrot.slane (!%p238_p2), %v1073_v30, %v404_v25  ;;  %v429_v33 = vrot.slane (!%p238_p2), %v1073_v30, %v424_v26 }
   0xc   : > { %v445_v52 = vrot.slane (!%p238_p2), %v1067_v27, %v444_v48  ;;  %v449_v55 = vrot.slane (!%p238_p2), %v1073_v30, %v444_v48  ;;  %v465_v56 = vrot.slane (!%p238_p2), %v1067_v27, %v464_v49  ;;  %v469_v57 = vrot.slane (!%p238_p2), %v1073_v30, %v464_v49  ;;  %v284_v49 = vld [vmem:[%s1134_s3] sm:$0xff] (!%p238_p2) }
   0xd   : > { %s1140_s25 = smov (!%p269_p3, %s886_s25), 1  ;;  %v479_v61 = vrot.slane %v1073_v30, %v474_v51  ;;  %v475_v62 = vrot.slane %v1067_v27, %v474_v51 }
   0xe   : > { %s907_s26 = sshll.u32 %s1140_s25, 3 }
   0xf   : > { %s273_s29 = scalar_lea.vmem %s1131_s0, %s907_s26 }
  0x10   : > { %v1025_v1 = vld [vmem:[%s273_s29] sm:$0xff] }
  0x11   : > { %v1029_v2 = vcombine.high %v1025_v1, %v1025_v1 }
  0x13   : > { %895 = vmatprep.subr.msk.mxu0 %vm295_vm0, %v1029_v2 }
  0x14   : > { %896 = vmatpush1.msk.msra.mxu0 %vm295_vm0, %v1025_v1 }
  0x15   : > { %897 = vmatmul.mubr.msk.f32.vlgmr.msra.gmra.mrb[0].mxu0 %vm291_vm1, %v283_v3 }
  0x16   : > { %723 = vmatprep.mubr.f32.mxu0 %v959_v0 }
  0xe8   : > { %v366_v4 = vpop.f32.mrb[0].mxu0 }
  0xe9   : > { %v368_v5 = vpop.f32.mrb[1].mxu0 }
  0xea   : > { %v371_v6 = vadd.f32 %v368_v5, %v366_v4 }
  0xec   : > { %372 = vadd.xlane.f32.xlu0 %v371_v6 }
 0x179   : > { %v373_v7 = vpop.xlane.xlu0 %372 }
 0x17a   : > { %v375_v8 = vmul.f32 0.00390625, %v373_v7 }
 0x17c   : > { %v376_v9 = vsub.f32 %v366_v4, %v375_v8  ;;  %v377_v10 = vsub.f32 %v368_v5, %v375_v8  ;;  %v495_v4 = vrot.slane %v1067_v27, %v494_v53  ;;  %v499_v5 = vrot.slane %v1073_v30, %v494_v53 }
 0x17e   : > { %v378_v11 = vmul.f32 %v376_v9, %v376_v9  ;;  %v379_v12 = vmul.f32 %v377_v10, %v377_v10 }
 0x180   : > { %v380_v13 = vadd.f32 %v379_v12, %v378_v11 }
 0x182   : > { %381 = vadd.xlane.f32.xlu0 %v380_v13 }
 0x20f   : > { %v382_v14 = vpop.xlane.xlu0 %381 }
 0x210   : > { %v383_v15 = vmul.f32 0.00390625, %v382_v14 }
 0x212   : > { %v384_v16 = vadd.f32 1e-05, %v383_v15 }
 0x214   : > { %945 = vrsqrt.f32 %v384_v16  ;;  %v514_v16 = vsub.s32 6, %v1060_v23 }
 0x21e   : > { %v946_v17 = vpop.eup %945 }
 0x21f   : > { %v387_v18 = vmul.f32 %v946_v17, %v377_v10  ;;  %v386_v19 = vmul.f32 %v946_v17, %v376_v9 }
 0x221   : > { %v1040_v20 = vmax.f32 %v387_v18, 0.0  ;;  %v1044_v21 = vmax.f32 %v386_v19, 0.0 }
 0x223   : > { %412 = vrot.lane.b32.xlu0 %v1040_v20, %s960_s9  ;;  %391 = vrot.lane.b32.xlu1 %v1040_v20, %s961_s10  ;;  %v481_v17 = vmul.f32 %v479_v61, %v1040_v20  ;;  %v480_v22 = vmul.f32 %v475_v62, %v1044_v21 }
 0x227   : > { %484 = vrot.lane.b32.xlu0 %v1040_v20, %s962_s11  ;;  %395 = vrot.lane.b32.xlu1 %v1044_v21, %s961_s10 }
 0x22b   : > { %504 = vrot.lane.b32.xlu0 %v1040_v20, %s963_s12  ;;  %415 = vrot.lane.b32.xlu1 %v1044_v21, %s960_s9 }
 0x22f   : > { %524 = vrot.lane.b32.xlu0 %v1040_v20, %s964_s13  ;;  %432 = vrot.lane.b32.xlu1 %v1040_v20, %s965_s14 }
 0x233   : > { %544 = vrot.lane.b32.xlu0 %v1040_v20, %s966_s15  ;;  %435 = vrot.lane.b32.xlu1 %v1044_v21, %s965_s14 }
 0x237   : > { %452 = vrot.lane.b32.xlu1 %v1040_v20, %s967_s16 }
 0x23b   : > { %455 = vrot.lane.b32.xlu1 %v1044_v21, %s967_s16 }
 0x23f   : > { %482 = vrot.lane.b32.xlu1 %v1044_v21, %s962_s11 }
 0x243   : > { %502 = vrot.lane.b32.xlu1 %v1044_v21, %s963_s12  ;;  %s908_s12 = sshll.u32 %s1140_s25, 4 }
 0x247   : > { %522 = vrot.lane.b32.xlu1 %v1044_v21, %s964_s13 }
 0x24b   : > { %542 = vrot.lane.b32.xlu1 %v1044_v21, %s966_s15  ;;  %s278_s15 = scalar_lea.vmem %s1138_s7, %s908_s12 }
 0x295   : > { %v392_v24 = vpop.permute.xlu1 %391  ;;  %v413_v36 = vpop.permute.xlu0 %412 }
 0x299   : > { %v396_v28 = vpop.permute.xlu1 %395  ;;  %v485_v54 = vpop.permute.xlu0 %484 }
 0x29a   : > { %v398_v34 = vsel %vm397_vm2, %v396_v28, %v392_v24  ;;  %v401_v35 = vsel %vm397_vm2, %v392_v24, %v396_v28  ;;  %v534_v24 = vsub.s32 7, %v1060_v23 }
 0x29b   : > { %v410_v40 = vmul.f32 %v405_v29, %v401_v35  ;;  %v411_v42 = vmul.f32 %v409_v32, %v398_v34  ;;  %v515_v29 = vrot.slane %v1067_v27, %v514_v16  ;;  %v519_v32 = vrot.slane %v1073_v30, %v514_v16 }
 0x29c   : > { %v535_v20 = vrot.slane %v1067_v27, %v534_v24 }
 0x29d   : > { %v416_v37 = vpop.permute.xlu1 %415  ;;  %v505_v10 = vpop.permute.xlu0 %504 }
 0x29e   : > { %v418_v38 = vsel %vm417_vm3, %v416_v37, %v413_v36  ;;  %v421_v39 = vsel %vm417_vm3, %v413_v36, %v416_v37 }
 0x29f   : > { %v430_v41 = vmul.f32 %v425_v31, %v421_v39  ;;  %v431_v43 = vmul.f32 %v429_v33, %v418_v38  ;;  %v539_v33 = vrot.slane %v1073_v30, %v534_v24 }
 0x2a1   : > { %v433_v44 = vpop.permute.xlu1 %432  ;;  %v909_v45 = vpack.c.bf16 %v431_v43, %v411_v42  ;;  %v911_v46 = vpack.c.bf16 %v430_v41, %v410_v40  ;;  %v525_v31 = vpop.permute.xlu0 %524  ;;  %v899_v41 = vld [vmem:[%s1132_s1 + $0x18] ss:$0 sm:$0xff] }
 0x2a3   : > { %910 = vmatprep.subr.bf16.mxu1 %v909_v45  ;;  %v898_v45 = vld [vmem:[%s1132_s1 + $0x10] ss:$0 sm:$0xff] }
 0x2a4   : > { %912 = vmatpush1.bf16.msra.mxu1 %v911_v46 }
 0x2a5   : > { %v436_v47 = vpop.permute.xlu1 %435  ;;  %v545_v42 = vpop.permute.xlu0 %544 }
 0x2a6   : > { %v438_v58 = vsel %vm437_vm4, %v436_v47, %v433_v44  ;;  %v441_v59 = vsel %vm437_vm4, %v433_v44, %v436_v47 }
 0x2a7   : > { %v450_v6 = vmul.f32 %v445_v52, %v441_v59  ;;  %v451_v7 = vmul.f32 %v449_v55, %v438_v58 }
 0x2a9   : > { %v453_v50 = vpop.permute.xlu1 %452 }
 0x2ad   : > { %v456_v60 = vpop.permute.xlu1 %455 }
 0x2ae   : > { %v458_v63 = vsel %vm457_vm5, %v456_v60, %v453_v50  ;;  %v461_v3 = vsel %vm457_vm5, %v453_v50, %v456_v60 }
 0x2af   : > { %v470_v8 = vmul.f32 %v465_v56, %v461_v3  ;;  %v471_v9 = vmul.f32 %v469_v57, %v458_v63 }
 0x2b1   : > { %v483_v11 = vpop.permute.xlu1 %482  ;;  %v913_v12 = vpack.c.bf16 %v471_v9, %v451_v7  ;;  %v915_v13 = vpack.c.bf16 %v470_v8, %v450_v6  ;;  %v285_v7 = vld [vmem:[%s1135_s4] sm:$0xff] }
 0x2b2   : > { %v487_v14 = vsel %vm486_vm6, %v483_v11, %v485_v54  ;;  %v491_v15 = vsel %vm486_vm6, %v485_v54, %v483_v11  ;;  %v286_v8 = vld [vmem:[%s1136_s5] sm:$0xff] }
 0x2b3   : > { %v500_v18 = vmul.f32 %v495_v4, %v487_v14  ;;  %v501_v19 = vmul.f32 %v499_v5, %v491_v15  ;;  %914 = vmatprep.subr.bf16.mxu1 %v913_v12  ;;  %v287_v12 = vld [vmem:[%s1137_s6] sm:$0xff] }
 0x2b4   : > { %916 = vmatpush1.bf16.msra.mxu1 %v915_v13 }
 0x2b5   : > { %v503_v25 = vpop.permute.xlu1 %502  ;;  %v917_v26 = vpack.c.bf16 %v501_v19, %v481_v17  ;;  %v919_v28 = vpack.c.bf16 %v500_v18, %v480_v22 }
 0x2b6   : > { %v507_v34 = vsel %vm506_vm7, %v503_v25, %v505_v10  ;;  %v511_v21 = vsel %vm506_vm7, %v505_v10, %v503_v25 }
 0x2b7   : > { %918 = vmatprep.subr.bf16.mxu1 %v917_v26  ;;  %v520_v37 = vmul.f32 %v515_v29, %v507_v34  ;;  %v521_v38 = vmul.f32 %v519_v32, %v511_v21 }
 0x2b8   : > { %920 = vmatpush1.bf16.msra.mxu1 %v919_v28 }
 0x2b9   : > { %v523_v23 = vpop.permute.xlu1 %522 }
 0x2ba   : > { %v527_v35 = vsel %vm526_vm8, %v523_v23, %v525_v31  ;;  %v531_v36 = vsel %vm526_vm8, %v525_v31, %v523_v23 }
 0x2bb   : > { %v540_v39 = vmul.f32 %v535_v20, %v527_v35  ;;  %v541_v40 = vmul.f32 %v539_v33, %v531_v36 }
 0x2bd   : > { %v543_v43 = vpop.permute.xlu1 %542  ;;  %v921_v27 = vpack.c.bf16 %v541_v40, %v521_v38  ;;  %v923_v44 = vpack.c.bf16 %v540_v39, %v520_v37 }
 0x2be   : > { %v551_v30 = vsel %vm546_vm9, %v545_v42, %v543_v43  ;;  %v547_v46 = vsel %vm546_vm9, %v543_v43, %v545_v42 }
 0x2bf   : > { %v561_v47 = vmul.f32 %v899_v41, %v551_v30  ;;  %922 = vmatprep.subr.bf16.mxu1 %v921_v27  ;;  %v560_v48 = vmul.f32 %v898_v45, %v547_v46 }
 0x2c0   : > { %924 = vmatpush1.bf16.msra.mxu1 %v923_v44 }
 0x2c1   : > { %582 = vmatprep.subr.mxu1 %v561_v47 }
 0x2c4   : > { %583 = vmatpush1.msra.mxu1 %v560_v48 }
 0x2c5   : > { %900 = vmatmul.mubr.msk.f32.vlgmr.msra.gmra.mrb[0].mxu1 %vm562_vm10, %v284_v49 }
 0x398   : > { %v632_v50 = vpop.f32.mrb[0].mxu1 }
 0x399   : > { %v634_v51 = vpop.f32.mrb[1].mxu1 }
 0x39a   : > { %v637_v52 = vadd.f32 %v634_v51, %v632_v50 }
 0x39c   : > { %638 = vadd.xlane.f32.xlu1 %v637_v52 }
 0x429   : > { %v639_v53 = vpop.xlane.xlu1 %638 }
 0x42a   : > { %v640_v54 = vmul.f32 0.00390625, %v639_v53 }
 0x42c   : > { %v641_v55 = vsub.f32 %v632_v50, %v640_v54  ;;  %v642_v56 = vsub.f32 %v634_v51, %v640_v54 }
 0x42e   : > { %v643_v57 = vmul.f32 %v641_v55, %v641_v55  ;;  %v644_v58 = vmul.f32 %v642_v56, %v642_v56 }
 0x430   : > { %v645_v59 = vadd.f32 %v644_v58, %v643_v57 }
 0x432   : > { %646 = vadd.xlane.f32.xlu0 %v645_v59 }
 0x4bf   : > { %v647_v60 = vpop.xlane.xlu0 %646 }
 0x4c0   : > { %v648_v61 = vmul.f32 0.00390625, %v647_v60 }
 0x4c2   : > { %v649_v62 = vadd.f32 1e-05, %v648_v61 }
 0x4c4   : > { %947 = vrsqrt.f32 %v649_v62 }
 0x4ce   : > { %v948_v63 = vpop.eup %947 }
 0x4cf   : > { %v652_v3 = vmul.f32 %v948_v63, %v642_v56  ;;  %v651_v4 = vmul.f32 %v948_v63, %v641_v55 }
 0x4d1   : > { %v654_v5 = vmax.f32 %v652_v3, 0.0  ;;  %v653_v6 = vmax.f32 %v651_v4, 0.0 }
 0x4d3   : > { %659 = vmatprep.subr.mxu0 %v654_v5 }
 0x4d4   : > { %660 = vmatpush1.msra.mxu0 %v653_v6 }
 0x4d5   : > { %901 = vmatmul.mubr.msk.f32.vlgmr.msra.gmra.mrb[2].mxu0 %vm655_vm11, %v285_v7  ;;  %902 = vmatprep.subr.msk.mxu0 %vm295_vm0, %v1029_v2  ;;  %v968_v2 = vmov 0  }
 0x4d6   : > { %903 = vmatpush1.msk.msra.mxu0 %vm295_vm0, %v1025_v1  ;;  %820 = vmatprep.mubr.f32.mxu0 %v959_v0 }
 0x4d7   : > { %943 = vset.pattern.permute.xlu0 %v968_v2 }
 0x4d9   : > { %904 = vmatmul.mubr.msk.f32.vlgmr.msra.gmra.mrb[4].mxu0 %vm291_vm1, %v286_v8 }
 0x5a8   : > { %v725_v9 = vpop.f32.mrb[2].mxu0 }
 0x5a9   : > { %v727_v10 = vpop.f32.mrb[3].mxu0 }
 0x5aa   : > { %v730_v11 = vadd.f32 %v727_v10, %v725_v9 }
 0x5ac   : > { %731 = vadd.xlane.f32.xlu0 %v730_v11  ;;  %v822_v18 = vpop.f32.mrb[4].mxu0 }
 0x5ad   : > { %v824_v19 = vpop.f32.mrb[5].mxu0 }
 0x5c2   : > { %750 = vperm.xlu0 %943, %v287_v12  }
 0x639   : > { %v732_v1 = vpop.xlane.xlu0 %731 }
 0x63a   : > { %v733_v0 = vmul.f32 0.00390625, %v732_v1 }
 0x63c   : > { %v734_v13 = vsub.f32 %v725_v9, %v733_v0  ;;  %v735_v14 = vsub.f32 %v727_v10, %v733_v0 }
 0x63e   : > { %v736_v15 = vmul.f32 %v734_v13, %v734_v13  ;;  %v737_v16 = vmul.f32 %v735_v14, %v735_v14 }
 0x640   : > { %v738_v17 = vadd.f32 %v737_v16, %v736_v15 }
 0x641   : > { %v751_v26 = vpop.permute.xlu0 %750 }
 0x642   : > { %739 = vadd.xlane.f32.xlu1 %v738_v17  ;;  %v823_v32 = vadd.f32 %v822_v18, %v751_v26  ;;  %v825_v20 = vadd.f32 %v824_v19, %v751_v26 }
 0x6cf   : > { %v740_v22 = vpop.xlane.xlu1 %739 }
 0x6d0   : > { %v741_v24 = vmul.f32 0.00390625, %v740_v22 }
 0x6d2   : > { %v742_v25 = vadd.f32 1e-05, %v741_v24 }
 0x6d4   : > { %949 = vrsqrt.f32 %v742_v25 }
 0x6de   : > { %v950_v28 = vpop.eup %949 }
 0x6df   : > { %v744_v29 = vmul.f32 %v950_v28, %v734_v13  ;;  %v745_v31 = vmul.f32 %v950_v28, %v735_v14 }
 0x6e1   : > { %v746_v33 = vmax.f32 %v744_v29, 0.0  ;;  %v747_v34 = vmax.f32 %v745_v31, 0.0 }
 0x6e3   : > { %v827_v21 = vadd.f32 %v823_v32, %v746_v33  ;;  %v828_v23 = vadd.f32 %v825_v20, %v747_v34 }
 0x6e5   : > { %829 = vst [vmem:[%s278_s15] sm:$0xff] %v827_v21  ;;  %830 = vst [vmem:[%s278_s15 + $0x8] sm:$0xff] %v828_v23 }
 0x6e6 PF: > { %s17_s24 = sadd.s32 1, %s957_s24  }
 0x6e7   : > { %p14_p4 = scmp.ge.s32.totalorder %s17_s24, 4  }
 0x6e9   :  { %16 = sbr.rel (!%p14_p4) target bundleno = 1 (0x1), region = 78 }

</bundles_post_ra>
